<compile_context>
chip_gen: v7x
topology: tpu7x:2x2x1
jax: 0.10.0
libtpu: 0.0.40
codegen_flags: <defaults>
</compile_context>

<pallas_src>
import functools

import jax
import jax.numpy as jnp
from jax import lax
from jax.experimental import pallas as pl
from jax.experimental.pallas import tpu as pltpu

EPS = 1e-5
MM_DTYPE = jnp.bfloat16      # MXU operand dtype (accumulation is always f32)
NEG_INF = -1e30


def _layernorm(x, g, b):
    mu = jnp.mean(x, axis=-1, keepdims=True)
    var = jnp.mean((x - mu) ** 2, axis=-1, keepdims=True)
    return (x - mu) * lax.rsqrt(var + EPS) * g + b


def fused_layer_kernel(tok_ref, emb_ref,
                       ln1_g_ref, ln1_b_ref, wqkv_ref, wo_ref,
                       ln2_g_ref, ln2_b_ref, w1_ref, b1_ref, w2_ref, b2_ref,
                       fng_ref, fnb_ref,
                       o_ref, x_scratch,
                       *, seq, tok_per_event, vocab, heads, dim_head, depth):
    """Grid = (batch, depth). One program = one transformer layer for one batch row.

    x_scratch (seq, D) f32 carries the activations across the depth axis.
    """
    layer = pl.program_id(1)
    d = heads * dim_head

    # ---- layer 0 only: embedding gather + intra-event sum (token_emb(x).sum(-2)) ----
    @pl.when(layer == 0)
    def _embed():
        tok = tok_ref[0]                                            # (N, T) int32
        viota = lax.broadcasted_iota(jnp.int32, (seq, vocab), 1)
        counts = jnp.zeros((seq, vocab), jnp.float32)
        for t in range(tok_per_event):                              # static & tiny
            counts = counts + (tok[:, t:t + 1] == viota).astype(jnp.float32)
        # counts are exact small ints (<= T) -> bf16 is lossless for them;
        # bf16 x bf16 is the MXU-native format (f32 x f32 is emulated, ~3x slower).
        x_scratch[...] = jnp.dot(counts.astype(MM_DTYPE), emb_ref[...],
                                 preferred_element_type=jnp.float32)

    x = x_scratch[...]                                              # (N, D) f32

    # per-sequence causal bias: a single (N, N) tensor, broadcast over heads in
    # the add below (never physically replicated per head).  Cheap VPU work.
    rows = lax.broadcasted_iota(jnp.int32, (seq, seq), 0)
    cols = lax.broadcasted_iota(jnp.int32, (seq, seq), 1)
    bias = jnp.where(cols <= rows, 0.0, NEG_INF).astype(jnp.float32)
    scale = 1.0 / (dim_head ** 0.5)

    # ---- attention sub-block (pre-LN), fused QKV projection ------------------
    h1 = _layernorm(x, ln1_g_ref[0], ln1_b_ref[0]).astype(MM_DTYPE)
    qkv = jnp.dot(h1, wqkv_ref[0], preferred_element_type=jnp.float32)   # (N, 3D)
    # (at production D>=512 these offsets are 128-lane aligned)
    q = qkv[:, :d] * scale
    k = qkv[:, d:2 * d]
    v = qkv[:, 2 * d:]

    def split(t):                                                   # (N, D) -> (H, N, dh)
        return jnp.stack([t[:, h * dim_head:(h + 1) * dim_head]
                          for h in range(heads)], axis=0)

    q3 = split(q.astype(MM_DTYPE))
    k3 = split(k.astype(MM_DTYPE))
    v3 = split(v.astype(MM_DTYPE))

    # head-batched contraction; per-sequence causal softmax in f32
    s = jnp.einsum("hqd,hkd->hqk", q3, k3,
                   preferred_element_type=jnp.float32) + bias       # (H, N, N)
    s = s - jnp.max(s, axis=-1, keepdims=True)
    p = jnp.exp(s)
    p = p * pl.reciprocal(jnp.sum(p, axis=-1, keepdims=True), approx=True)
    o3 = jnp.einsum("hqk,hkd->hqd", p.astype(MM_DTYPE), v3,
                    preferred_element_type=jnp.float32)             # (H, N, dh) f32

    # single full-K output projection: concat heads back to (N, D), ONE dot
    # with the full (D, D) W_o (no per-head K=dim_head matmul loop).
    o_cat = jnp.concatenate([o3[h] for h in range(heads)], axis=-1)  # (N, D)
    x = x + jnp.dot(o_cat.astype(MM_DTYPE), wo_ref[0],
                    preferred_element_type=jnp.float32)

    # ---- feed-forward sub-block ----------------------------------------------
    h2 = _layernorm(x, ln2_g_ref[0], ln2_b_ref[0]).astype(MM_DTYPE)
    ff = jnp.dot(h2, w1_ref[0], preferred_element_type=jnp.float32) + b1_ref[0]
    ff = jax.nn.gelu(ff, approximate=True).astype(MM_DTYPE)
    ff = jnp.dot(ff, w2_ref[0], preferred_element_type=jnp.float32) + b2_ref[0]
    x = x + ff

    x_scratch[...] = x

    # ---- last layer only: final LayerNorm + single store ---------------------
    @pl.when(layer == depth - 1)
    def _finalize():
        o_ref[0] = _layernorm(x, fng_ref[...], fnb_ref[...]).astype(o_ref.dtype)


def _vmem_limit_bytes():
    """Generation-aware VMEM budget: ~75% of physical, leaving headroom for
    compiler scratch and BlockSpec double-buffers.  None -> compiler default."""
    try:
        cap = pltpu.get_tpu_info().vmem_capacity_bytes
    except Exception:
        return None
    return (int(cap) * 3) // 4


def dual_transformer_forward(tokens, params, *, heads):
    """Equivalent of DualTransformer.forward(x) (event-transformer path)."""
    B, N, T = tokens.shape
    emb = params["emb"]
    vocab, D = emb.shape
    layers = params["layers"]
    depth = len(layers)
    dim_head = D // heads
    hidden = layers[0]["w1"].shape[1]

    stack = lambda name: jnp.stack([L[name] for L in layers], axis=0)   # (depth, ...)
    # fuse wq/wk/wv into a single (D, 3D) weight -> one projection matmul per layer
    wqkv = jnp.concatenate([stack("wq"), stack("wk"), stack("wv")],
                           axis=-1).astype(MM_DTYPE)                    # (depth, D, 3D)

    inputs = (
        tokens.astype(jnp.int32),                 # (B, N, T)
        emb.astype(MM_DTYPE),                     # (vocab, D)
        stack("ln1_g"), stack("ln1_b"),           # (depth, 1, D)
        wqkv,
        stack("wo").astype(MM_DTYPE),             # (depth, D, D)
        stack("ln2_g"), stack("ln2_b"),
        stack("w1").astype(MM_DTYPE), stack("b1"),
        stack("w2").astype(MM_DTYPE), stack("b2"),
        params["norm_g"], params["norm_b"],       # (1, D)
    )

    # BlockSpec helpers: per-batch blocks, per-layer streamed blocks, resident blocks
    per_batch = lambda *tail: pl.BlockSpec((1,) + tail,
                                           lambda b, l: (b,) + (0,) * len(tail))
    per_layer = lambda *tail: pl.BlockSpec((1,) + tail,
                                           lambda b, l: (l,) + (0,) * len(tail))
    resident = lambda *shape: pl.BlockSpec(shape,
                                           lambda b, l: (0,) * len(shape))

    in_specs = [
        per_batch(N, T),                          # tokens
        resident(vocab, D),                       # embedding table
        per_layer(1, D), per_layer(1, D),         # ln1 g/b
        per_layer(D, 3 * D),                      # fused Wqkv
        per_layer(D, D),                          # Wo
        per_layer(1, D), per_layer(1, D),         # ln2 g/b
        per_layer(D, hidden), per_layer(1, hidden),   # W1 / b1
        per_layer(hidden, D), per_layer(1, D),        # W2 / b2
        resident(1, D), resident(1, D),           # final LN g/b
    ]

    kernel = functools.partial(
        fused_layer_kernel, seq=N, tok_per_event=T, vocab=vocab,
        heads=heads, dim_head=dim_head, depth=depth)

    cp_kwargs = dict(dimension_semantics=("parallel", "arbitrary"))
    vlim = _vmem_limit_bytes()
    if vlim is not None:
        cp_kwargs["vmem_limit_bytes"] = vlim

    out = pl.pallas_call(
        kernel,
        out_shape=jax.ShapeDtypeStruct((B, N, D), jnp.float32),
        grid_spec=pltpu.PrefetchScalarGridSpec(
            num_scalar_prefetch=0,
            grid=(B, depth),
            in_specs=in_specs,
            out_specs=pl.BlockSpec((1, N, D), lambda b, l: (b, 0, 0)),
            scratch_shapes=[pltpu.VMEM((N, D), jnp.float32)],   # activations carry
        ),
        compiler_params=pltpu.CompilerParams(**cp_kwargs),
    )(*inputs)
    return out


# ------------------------- parameters & pure-JAX reference ----------------------
def make_params(key, vocab, d, depth):
    hidden = 4 * d
    keys = jax.random.split(key, 1 + depth * 6)
    emb = 0.02 * jax.random.normal(keys[0], (vocab, d), jnp.float32)
    layers, ki = [], 1
    for _ in range(depth):
        layers.append(dict(
            ln1_g=jnp.ones((1, d), jnp.float32), ln1_b=jnp.zeros((1, d), jnp.float32),
            wq=0.02 * jax.random.normal(keys[ki + 0], (d, d), jnp.float32),
            wk=0.02 * jax.random.normal(keys[ki + 1], (d, d), jnp.float32),
            wv=0.02 * jax.random.normal(keys[ki + 2], (d, d), jnp.float32),
            wo=0.02 * jax.random.normal(keys[ki + 3], (d, d), jnp.float32),
            ln2_g=jnp.ones((1, d), jnp.float32), ln2_b=jnp.zeros((1, d), jnp.float32),
            w1=0.02 * jax.random.normal(keys[ki + 4], (d, hidden), jnp.float32),
            b1=jnp.zeros((1, hidden), jnp.float32),
            w2=0.02 * jax.random.normal(keys[ki + 5], (hidden, d), jnp.float32),
            b2=jnp.zeros((1, d), jnp.float32),
        ))
        ki += 6
    return dict(emb=emb, layers=layers,
                norm_g=jnp.ones((1, d), jnp.float32),
                norm_b=jnp.zeros((1, d), jnp.float32))


def ref_forward(tokens, params, *, heads):
    d = params["emb"].shape[1]
    dim_head = d // heads
    x = jnp.take(params["emb"], tokens, axis=0).sum(axis=-2)
    n = x.shape[1]
    causal = jnp.tril(jnp.ones((n, n), bool))
    for L in params["layers"]:
        h = _layernorm(x, L["ln1_g"][0], L["ln1_b"][0])
        q, k, v = h @ L["wq"], h @ L["wk"], h @ L["wv"]
        bsz = x.shape[0]
        qh = q.reshape(bsz, n, heads, dim_head).transpose(0, 2, 1, 3)
        kh = k.reshape(bsz, n, heads, dim_head).transpose(0, 2, 1, 3)
        vh = v.reshape(bsz, n, heads, dim_head).transpose(0, 2, 1, 3)
        s = jnp.einsum("bhqd,bhkd->bhqk", qh, kh) / (dim_head ** 0.5)
        s = jnp.where(causal[None, None], s, NEG_INF)
        p = jax.nn.softmax(s, axis=-1)
        a = jnp.einsum("bhqk,bhkd->bhqd", p, vh).transpose(0, 2, 1, 3).reshape(bsz, n, d)
        x = x + a @ L["wo"]
        h2 = _layernorm(x, L["ln2_g"][0], L["ln2_b"][0])
        ff = jax.nn.gelu(h2 @ L["w1"] + L["b1"][0], approximate=True) @ L["w2"] + L["b2"][0]
        x = x + ff
    return _layernorm(x, params["norm_g"][0], params["norm_b"][0])


if __name__ == "__main__":
    # Small config consistent with the module: x is (B, N, max_token_seq) int ids.
    vocab_size, n_embd, heads, depth = 64, 32, 2, 2
    B, N, T = 2, 8, 4

    key = jax.random.PRNGKey(0)
    pkey, xkey = jax.random.split(key)
    params = make_params(pkey, vocab_size, n_embd, depth)
    tokens = jax.random.randint(xkey, (B, N, T), 0, vocab_size, dtype=jnp.int32)

    out = dual_transformer_forward(tokens, params, heads=heads)
    out = jax.block_until_ready(out)

    ref = ref_forward(tokens, params, heads=heads)
    assert out.shape == (B, N, n_embd)
    # bf16 MXU operands (incl. embedding table) vs f32 reference -> relaxed tolerance.
    assert jnp.allclose(out, ref, rtol=3e-2, atol=3e-2), "mismatch vs JAX reference"

    # TODO(synk): generate()/forward_token()/sample_top_p_k (host-side autoregressive
    # sampling loop with tokenizer logic and DynamicCache) is data-dependent Python
    # control flow, not a kernel; dropout is an inference-time no-op.
    print("KERNEL_OK")
</pallas_src>

<mosaic_0001>
module attributes {stable_mosaic.version = 11 : i64} {
  func.func @fused_layer_kernel(%arg0: i32, %arg1: i32, %arg2: memref<1x8x4xi32, #tpu.memory_space<vmem>>, %arg3: memref<64x32xbf16, #tpu.memory_space<vmem>>, %arg4: memref<1x1x32xf32, #tpu.memory_space<vmem>>, %arg5: memref<1x1x32xf32, #tpu.memory_space<vmem>>, %arg6: memref<1x32x96xbf16, #tpu.memory_space<vmem>>, %arg7: memref<1x32x32xbf16, #tpu.memory_space<vmem>>, %arg8: memref<1x1x32xf32, #tpu.memory_space<vmem>>, %arg9: memref<1x1x32xf32, #tpu.memory_space<vmem>>, %arg10: memref<1x32x128xbf16, #tpu.memory_space<vmem>>, %arg11: memref<1x1x128xf32, #tpu.memory_space<vmem>>, %arg12: memref<1x128x32xbf16, #tpu.memory_space<vmem>>, %arg13: memref<1x1x32xf32, #tpu.memory_space<vmem>>, %arg14: memref<1x32xf32, #tpu.memory_space<vmem>>, %arg15: memref<1x32xf32, #tpu.memory_space<vmem>>, %arg16: memref<1x8x32xf32, #tpu.memory_space<vmem>>, %arg17: memref<8x32xf32, #tpu.memory_space<vmem>>) attributes {dimension_semantics = [#tpu.dimension_semantics<parallel>, #tpu.dimension_semantics<arbitrary>], iteration_bounds = array<i64: 2, 2>, scalar_prefetch = 0 : i64, scratch_operands = 1 : i64, tpu.core_type = #tpu.core_type<tc>, window_params = [{transform_indices = @transform_0, window_bounds = array<i64: 1, 8, 4>}, {pipeline_mode = #tpu.pipeline_mode<synchronous>, transform_indices = @transform_1, window_bounds = array<i64: 64, 32>}, {transform_indices = @transform_2, window_bounds = array<i64: 1, 1, 32>}, {transform_indices = @transform_3, window_bounds = array<i64: 1, 1, 32>}, {transform_indices = @transform_4, window_bounds = array<i64: 1, 32, 96>}, {transform_indices = @transform_5, window_bounds = array<i64: 1, 32, 32>}, {transform_indices = @transform_6, window_bounds = array<i64: 1, 1, 32>}, {transform_indices = @transform_7, window_bounds = array<i64: 1, 1, 32>}, {transform_indices = @transform_8, window_bounds = array<i64: 1, 32, 128>}, {transform_indices = @transform_9, window_bounds = array<i64: 1, 1, 128>}, {transform_indices = @transform_10, window_bounds = array<i64: 1, 128, 32>}, {transform_indices = @transform_11, window_bounds = array<i64: 1, 1, 32>}, {pipeline_mode = #tpu.pipeline_mode<synchronous>, transform_indices = @transform_12, window_bounds = array<i64: 1, 32>}, {pipeline_mode = #tpu.pipeline_mode<synchronous>, transform_indices = @transform_13, window_bounds = array<i64: 1, 32>}, {transform_indices = @transform_14, window_bounds = array<i64: 1, 8, 32>}]} {
    %c0_i32 = arith.constant 0 : i32
    %0 = arith.cmpi eq, %arg1, %c0_i32 : i32
    %1 = arith.extui %0 : i1 to i32
    %c0_i32_0 = arith.constant 0 : i32
    %2 = arith.cmpi ne, %1, %c0_i32_0 : i32
    scf.if %2 {
      %c0_59 = arith.constant 0 : index
      %c0_60 = arith.constant 0 : index
      %c0_61 = arith.constant 0 : index
      %149 = vector.load %arg2[%c0_59, %c0_60, %c0_61] : memref<1x8x4xi32, #tpu.memory_space<vmem>>, vector<1x8x4xi32>
      %150 = vector.shape_cast %149 : vector<1x8x4xi32> to vector<8x4xi32>
      %151 = tpu.iota {dimensions = array<i32: 1>} : vector<8x64xi32>
      %cst_62 = arith.constant 0.000000e+00 : f32
      %152 = vector.broadcast %cst_62 : f32 to vector<8x64xf32>
      %153 = vector.extract_strided_slice %150 {offsets = [0, 0], sizes = [8, 1], strides = [1, 1]} : vector<8x4xi32> to vector<8x1xi32>
      %154 = vector.broadcast %153 : vector<8x1xi32> to vector<8x64xi32>
      %155 = arith.cmpi eq, %154, %151 : vector<8x64xi32>
      %156 = arith.extui %155 : vector<8x64xi1> to vector<8x64xi32>
      %157 = arith.sitofp %156 : vector<8x64xi32> to vector<8x64xf32>
      %158 = arith.addf %152, %157 : vector<8x64xf32>
      %159 = vector.extract_strided_slice %150 {offsets = [0, 1], sizes = [8, 1], strides = [1, 1]} : vector<8x4xi32> to vector<8x1xi32>
      %160 = vector.broadcast %159 : vector<8x1xi32> to vector<8x64xi32>
      %161 = arith.cmpi eq, %160, %151 : vector<8x64xi32>
      %162 = arith.extui %161 : vector<8x64xi1> to vector<8x64xi32>
      %163 = arith.sitofp %162 : vector<8x64xi32> to vector<8x64xf32>
      %164 = arith.addf %158, %163 : vector<8x64xf32>
      %165 = vector.extract_strided_slice %150 {offsets = [0, 2], sizes = [8, 1], strides = [1, 1]} : vector<8x4xi32> to vector<8x1xi32>
      %166 = vector.broadcast %165 : vector<8x1xi32> to vector<8x64xi32>
      %167 = arith.cmpi eq, %166, %151 : vector<8x64xi32>
      %168 = arith.extui %167 : vector<8x64xi1> to vector<8x64xi32>
      %169 = arith.sitofp %168 : vector<8x64xi32> to vector<8x64xf32>
      %170 = arith.addf %164, %169 : vector<8x64xf32>
      %171 = vector.extract_strided_slice %150 {offsets = [0, 3], sizes = [8, 1], strides = [1, 1]} : vector<8x4xi32> to vector<8x1xi32>
      %172 = vector.broadcast %171 : vector<8x1xi32> to vector<8x64xi32>
      %173 = arith.cmpi eq, %172, %151 : vector<8x64xi32>
      %174 = arith.extui %173 : vector<8x64xi1> to vector<8x64xi32>
      %175 = arith.sitofp %174 : vector<8x64xi32> to vector<8x64xf32>
      %176 = arith.addf %170, %175 : vector<8x64xf32>
      %177 = arith.truncf %176 : vector<8x64xf32> to vector<8x64xbf16>
      %c0_63 = arith.constant 0 : index
      %c0_64 = arith.constant 0 : index
      %178 = vector.load %arg3[%c0_63, %c0_64] : memref<64x32xbf16, #tpu.memory_space<vmem>>, vector<64x32xbf16>
      %cst_65 = arith.constant dense<0.000000e+00> : vector<8x32xf32>
      %179 = tpu.matmul %177, %178, %cst_65 {dimension_numbers = #tpu.dot_dimension_numbers<[1], [0], [0], [1], [0, 0, 1, 1], [], []>} : vector<8x64xbf16>, vector<64x32xbf16>, vector<8x32xf32> -> vector<8x32xf32>
      %c0_66 = arith.constant 0 : index
      %c0_67 = arith.constant 0 : index
      %180 = vector.load %arg17[%c0_66, %c0_67] : memref<8x32xf32, #tpu.memory_space<vmem>>, vector<8x32xf32>
      tpu.vector_store %arg17[%c0_66, %c0_67], %179 {strides = array<i32>} : memref<8x32xf32, #tpu.memory_space<vmem>>, vector<8x32xf32>,
    } else {
    }
    %c0 = arith.constant 0 : index
    %c0_1 = arith.constant 0 : index
    %3 = vector.load %arg17[%c0, %c0_1] : memref<8x32xf32, #tpu.memory_space<vmem>>, vector<8x32xf32>
    %4 = tpu.iota {dimensions = array<i32: 0>} : vector<8x8xi32>
    %5 = tpu.iota {dimensions = array<i32: 1>} : vector<8x8xi32>
    %6 = arith.cmpi sle, %5, %4 : vector<8x8xi32>
    %cst = arith.constant 0.000000e+00 : f32
    %cst_2 = arith.constant -1.000000e+30 : f32
    %7 = vector.broadcast %cst : f32 to vector<8x8xf32>
    %8 = vector.broadcast %cst_2 : f32 to vector<8x8xf32>
    %9 = arith.select %6, %7, %8 : vector<8x8xi1>, vector<8x8xf32>
    %c0_3 = arith.constant 0 : index
    %c0_4 = arith.constant 0 : index
    %c0_5 = arith.constant 0 : index
    %10 = vector.load %arg4[%c0_3, %c0_4, %c0_5] : memref<1x1x32xf32, #tpu.memory_space<vmem>>, vector<1x1x32xf32>
    %11 = vector.shape_cast %10 : vector<1x1x32xf32> to vector<1x32xf32>
    %c0_6 = arith.constant 0 : index
    %c0_7 = arith.constant 0 : index
    %c0_8 = arith.constant 0 : index
    %12 = vector.load %arg5[%c0_6, %c0_7, %c0_8] : memref<1x1x32xf32, #tpu.memory_space<vmem>>, vector<1x1x32xf32>
    %13 = vector.shape_cast %12 : vector<1x1x32xf32> to vector<1x32xf32>
    %cst_9 = arith.constant dense<0.000000e+00> : vector<8xf32>
    %14 = vector.multi_reduction <add>, %3, %cst_9 [1] : vector<8x32xf32> to vector<8xf32>
    %15 = vector.shape_cast %14 : vector<8xf32> to vector<8x1xf32>
    %cst_10 = arith.constant 3.200000e+01 : f32
    %16 = vector.broadcast %cst_10 : f32 to vector<8x1xf32>
    %17 = arith.divf %15, %16 : vector<8x1xf32>
    %18 = vector.broadcast %17 : vector<8x1xf32> to vector<8x32xf32>
    %19 = arith.subf %3, %18 : vector<8x32xf32>
    %20 = arith.mulf %19, %19 : vector<8x32xf32>
    %cst_11 = arith.constant dense<0.000000e+00> : vector<8xf32>
    %21 = vector.multi_reduction <add>, %20, %cst_11 [1] : vector<8x32xf32> to vector<8xf32>
    %22 = vector.shape_cast %21 : vector<8xf32> to vector<8x1xf32>
    %cst_12 = arith.constant 3.200000e+01 : f32
    %23 = vector.broadcast %cst_12 : f32 to vector<8x1xf32>
    %24 = arith.divf %22, %23 : vector<8x1xf32>
    %25 = vector.broadcast %17 : vector<8x1xf32> to vector<8x32xf32>
    %26 = arith.subf %3, %25 : vector<8x32xf32>
    %cst_13 = arith.constant 9.99999974E-6 : f32
    %27 = vector.broadcast %cst_13 : f32 to vector<8x1xf32>
    %28 = arith.addf %24, %27 : vector<8x1xf32>
    %29 = math.rsqrt %28 : vector<8x1xf32>
    %30 = vector.broadcast %29 : vector<8x1xf32> to vector<8x32xf32>
    %31 = arith.mulf %26, %30 : vector<8x32xf32>
    %32 = vector.broadcast %11 : vector<1x32xf32> to vector<8x32xf32>
    %33 = arith.mulf %31, %32 : vector<8x32xf32>
    %34 = vector.broadcast %13 : vector<1x32xf32> to vector<8x32xf32>
    %35 = arith.addf %33, %34 : vector<8x32xf32>
    %36 = arith.truncf %35 : vector<8x32xf32> to vector<8x32xbf16>
    %c0_14 = arith.constant 0 : index
    %c0_15 = arith.constant 0 : index
    %c0_16 = arith.constant 0 : index
    %37 = vector.load %arg6[%c0_14, %c0_15, %c0_16] : memref<1x32x96xbf16, #tpu.memory_space<vmem>>, vector<1x32x96xbf16>
    %38 = vector.shape_cast %37 : vector<1x32x96xbf16> to vector<32x96xbf16>
    %cst_17 = arith.constant dense<0.000000e+00> : vector<8x96xf32>
    %39 = tpu.matmul %36, %38, %cst_17 {dimension_numbers = #tpu.dot_dimension_numbers<[1], [0], [0], [1], [0, 0, 1, 1], [], []>} : vector<8x32xbf16>, vector<32x96xbf16>, vector<8x96xf32> -> vector<8x96xf32>
    %40 = vector.extract_strided_slice %39 {offsets = [0, 0], sizes = [8, 32], strides = [1, 1]} : vector<8x96xf32> to vector<8x32xf32>
    %cst_18 = arith.constant 2.500000e-01 : f32
    %41 = vector.broadcast %cst_18 : f32 to vector<8x32xf32>
    %42 = arith.mulf %40, %41 : vector<8x32xf32>
    %43 = vector.extract_strided_slice %39 {offsets = [0, 32], sizes = [8, 32], strides = [1, 1]} : vector<8x96xf32> to vector<8x32xf32>
    %44 = vector.extract_strided_slice %39 {offsets = [0, 64], sizes = [8, 32], strides = [1, 1]} : vector<8x96xf32> to vector<8x32xf32>
    %45 = arith.truncf %42 : vector<8x32xf32> to vector<8x32xbf16>
    %46 = vector.extract_strided_slice %45 {offsets = [0, 0], sizes = [8, 16], strides = [1, 1]} : vector<8x32xbf16> to vector<8x16xbf16>
    %47 = vector.extract_strided_slice %45 {offsets = [0, 16], sizes = [8, 16], strides = [1, 1]} : vector<8x32xbf16> to vector<8x16xbf16>
    %48 = vector.shape_cast %46 : vector<8x16xbf16> to vector<1x8x16xbf16>
    %49 = vector.shape_cast %47 : vector<8x16xbf16> to vector<1x8x16xbf16>
    %50 = tpu.concatenate %48, %49 in 0 : vector<1x8x16xbf16>, vector<1x8x16xbf16> -> vector<2x8x16xbf16>
    %51 = arith.truncf %43 : vector<8x32xf32> to vector<8x32xbf16>
    %52 = vector.extract_strided_slice %51 {offsets = [0, 0], sizes = [8, 16], strides = [1, 1]} : vector<8x32xbf16> to vector<8x16xbf16>
    %53 = vector.extract_strided_slice %51 {offsets = [0, 16], sizes = [8, 16], strides = [1, 1]} : vector<8x32xbf16> to vector<8x16xbf16>
    %54 = vector.shape_cast %52 : vector<8x16xbf16> to vector<1x8x16xbf16>
    %55 = vector.shape_cast %53 : vector<8x16xbf16> to vector<1x8x16xbf16>
    %56 = tpu.concatenate %54, %55 in 0 : vector<1x8x16xbf16>, vector<1x8x16xbf16> -> vector<2x8x16xbf16>
    %57 = arith.truncf %44 : vector<8x32xf32> to vector<8x32xbf16>
    %58 = vector.extract_strided_slice %57 {offsets = [0, 0], sizes = [8, 16], strides = [1, 1]} : vector<8x32xbf16> to vector<8x16xbf16>
    %59 = vector.extract_strided_slice %57 {offsets = [0, 16], sizes = [8, 16], strides = [1, 1]} : vector<8x32xbf16> to vector<8x16xbf16>
    %60 = vector.shape_cast %58 : vector<8x16xbf16> to vector<1x8x16xbf16>
    %61 = vector.shape_cast %59 : vector<8x16xbf16> to vector<1x8x16xbf16>
    %62 = tpu.concatenate %60, %61 in 0 : vector<1x8x16xbf16>, vector<1x8x16xbf16> -> vector<2x8x16xbf16>
    "tpu.trace_start"() <{level = 10 : i32, message = "hqd,hkd->hqk"}> : () -> ()
    %cst_19 = arith.constant dense<0.000000e+00> : vector<2x8x8xf32>
    %63 = tpu.matmul %50, %56, %cst_19 {dimension_numbers = #tpu.dot_dimension_numbers<[2], [2], [1], [1], [0, 0, 0, 1, 1, 1], [0], [0]>} : vector<2x8x16xbf16>, vector<2x8x16xbf16>, vector<2x8x8xf32> -> vector<2x8x8xf32>
    "tpu.trace_stop"() : () -> ()
    %64 = vector.shape_cast %9 : vector<8x8xf32> to vector<1x8x8xf32>
    %65 = vector.broadcast %64 : vector<1x8x8xf32> to vector<2x8x8xf32>
    %66 = arith.addf %63, %65 : vector<2x8x8xf32>
    %cst_20 = arith.constant dense<0xFF800000> : vector<2x8xf32>
    %67 = vector.multi_reduction <maximumf>, %66, %cst_20 [2] : vector<2x8x8xf32> to vector<2x8xf32>
    %68 = vector.shape_cast %67 : vector<2x8xf32> to vector<2x8x1xf32>
    %69 = vector.broadcast %68 : vector<2x8x1xf32> to vector<2x8x8xf32>
    %70 = arith.subf %66, %69 : vector<2x8x8xf32>
    %71 = math.exp %70 : vector<2x8x8xf32>
    %cst_21 = arith.constant dense<0.000000e+00> : vector<2x8xf32>
    %72 = vector.multi_reduction <add>, %71, %cst_21 [2] : vector<2x8x8xf32> to vector<2x8xf32>
    %73 = vector.shape_cast %72 : vector<2x8xf32> to vector<2x8x1xf32>
    %74 = tpu.reciprocal %73 {approx = true} : vector<2x8x1xf32> -> vector<2x8x1xf32>
    %75 = vector.broadcast %74 : vector<2x8x1xf32> to vector<2x8x8xf32>
    %76 = arith.mulf %71, %75 : vector<2x8x8xf32>
    %77 = arith.truncf %76 : vector<2x8x8xf32> to vector<2x8x8xbf16>
    "tpu.trace_start"() <{level = 10 : i32, message = "hqk,hkd->hqd"}> : () -> ()
    %cst_22 = arith.constant dense<0.000000e+00> : vector<2x8x16xf32>
    %78 = tpu.matmul %77, %62, %cst_22 {dimension_numbers = #tpu.dot_dimension_numbers<[2], [1], [1], [2], [0, 0, 0, 1, 1, 2], [0], [0]>} : vector<2x8x8xbf16>, vector<2x8x16xbf16>, vector<2x8x16xf32> -> vector<2x8x16xf32>
    "tpu.trace_stop"() : () -> ()
    %79 = vector.extract_strided_slice %78 {offsets = [0, 0, 0], sizes = [1, 8, 16], strides = [1, 1, 1]} : vector<2x8x16xf32> to vector<1x8x16xf32>
    %80 = vector.shape_cast %79 : vector<1x8x16xf32> to vector<8x16xf32>
    %81 = vector.extract_strided_slice %78 {offsets = [1, 0, 0], sizes = [1, 8, 16], strides = [1, 1, 1]} : vector<2x8x16xf32> to vector<1x8x16xf32>
    %82 = vector.shape_cast %81 : vector<1x8x16xf32> to vector<8x16xf32>
    %83 = tpu.concatenate %80, %82 in 1 : vector<8x16xf32>, vector<8x16xf32> -> vector<8x32xf32>
    %84 = arith.truncf %83 : vector<8x32xf32> to vector<8x32xbf16>
    %c0_23 = arith.constant 0 : index
    %c0_24 = arith.constant 0 : index
    %c0_25 = arith.constant 0 : index
    %85 = vector.load %arg7[%c0_23, %c0_24, %c0_25] : memref<1x32x32xbf16, #tpu.memory_space<vmem>>, vector<1x32x32xbf16>
    %86 = vector.shape_cast %85 : vector<1x32x32xbf16> to vector<32x32xbf16>
    %cst_26 = arith.constant dense<0.000000e+00> : vector<8x32xf32>
    %87 = tpu.matmul %84, %86, %cst_26 {dimension_numbers = #tpu.dot_dimension_numbers<[1], [0], [0], [1], [0, 0, 1, 1], [], []>} : vector<8x32xbf16>, vector<32x32xbf16>, vector<8x32xf32> -> vector<8x32xf32>
    %88 = arith.addf %3, %87 : vector<8x32xf32>
    %c0_27 = arith.constant 0 : index
    %c0_28 = arith.constant 0 : index
    %c0_29 = arith.constant 0 : index
    %89 = vector.load %arg8[%c0_27, %c0_28, %c0_29] : memref<1x1x32xf32, #tpu.memory_space<vmem>>, vector<1x1x32xf32>
    %90 = vector.shape_cast %89 : vector<1x1x32xf32> to vector<1x32xf32>
    %c0_30 = arith.constant 0 : index
    %c0_31 = arith.constant 0 : index
    %c0_32 = arith.constant 0 : index
    %91 = vector.load %arg9[%c0_30, %c0_31, %c0_32] : memref<1x1x32xf32, #tpu.memory_space<vmem>>, vector<1x1x32xf32>
    %92 = vector.shape_cast %91 : vector<1x1x32xf32> to vector<1x32xf32>
    %cst_33 = arith.constant dense<0.000000e+00> : vector<8xf32>
    %93 = vector.multi_reduction <add>, %88, %cst_33 [1] : vector<8x32xf32> to vector<8xf32>
    %94 = vector.shape_cast %93 : vector<8xf32> to vector<8x1xf32>
    %cst_34 = arith.constant 3.200000e+01 : f32
    %95 = vector.broadcast %cst_34 : f32 to vector<8x1xf32>
    %96 = arith.divf %94, %95 : vector<8x1xf32>
    %97 = vector.broadcast %96 : vector<8x1xf32> to vector<8x32xf32>
    %98 = arith.subf %88, %97 : vector<8x32xf32>
    %99 = arith.mulf %98, %98 : vector<8x32xf32>
    %cst_35 = arith.constant dense<0.000000e+00> : vector<8xf32>
    %100 = vector.multi_reduction <add>, %99, %cst_35 [1] : vector<8x32xf32> to vector<8xf32>
    %101 = vector.shape_cast %100 : vector<8xf32> to vector<8x1xf32>
    %cst_36 = arith.constant 3.200000e+01 : f32
    %102 = vector.broadcast %cst_36 : f32 to vector<8x1xf32>
    %103 = arith.divf %101, %102 : vector<8x1xf32>
    %104 = vector.broadcast %96 : vector<8x1xf32> to vector<8x32xf32>
    %105 = arith.subf %88, %104 : vector<8x32xf32>
    %cst_37 = arith.constant 9.99999974E-6 : f32
    %106 = vector.broadcast %cst_37 : f32 to vector<8x1xf32>
    %107 = arith.addf %103, %106 : vector<8x1xf32>
    %108 = math.rsqrt %107 : vector<8x1xf32>
    %109 = vector.broadcast %108 : vector<8x1xf32> to vector<8x32xf32>
    %110 = arith.mulf %105, %109 : vector<8x32xf32>
    %111 = vector.broadcast %90 : vector<1x32xf32> to vector<8x32xf32>
    %112 = arith.mulf %110, %111 : vector<8x32xf32>
    %113 = vector.broadcast %92 : vector<1x32xf32> to vector<8x32xf32>
    %114 = arith.addf %112, %113 : vector<8x32xf32>
    %115 = arith.truncf %114 : vector<8x32xf32> to vector<8x32xbf16>
    %c0_38 = arith.constant 0 : index
    %c0_39 = arith.constant 0 : index
    %c0_40 = arith.constant 0 : index
    %116 = vector.load %arg10[%c0_38, %c0_39, %c0_40] : memref<1x32x128xbf16, #tpu.memory_space<vmem>>, vector<1x32x128xbf16>
    %117 = vector.shape_cast %116 : vector<1x32x128xbf16> to vector<32x128xbf16>
    %cst_41 = arith.constant dense<0.000000e+00> : vector<8x128xf32>
    %118 = tpu.matmul %115, %117, %cst_41 {dimension_numbers = #tpu.dot_dimension_numbers<[1], [0], [0], [1], [0, 0, 1, 1], [], []>} : vector<8x32xbf16>, vector<32x128xbf16>, vector<8x128xf32> -> vector<8x128xf32>
    %c0_42 = arith.constant 0 : index
    %c0_43 = arith.constant 0 : index
    %c0_44 = arith.constant 0 : index
    %119 = vector.load %arg11[%c0_42, %c0_43, %c0_44] : memref<1x1x128xf32, #tpu.memory_space<vmem>>, vector<1x1x128xf32>
    %120 = vector.shape_cast %119 : vector<1x1x128xf32> to vector<1x128xf32>
    %121 = vector.broadcast %120 : vector<1x128xf32> to vector<8x128xf32>
    %122 = arith.addf %118, %121 : vector<8x128xf32>
    %123 = arith.mulf %122, %122 : vector<8x128xf32>
    %124 = arith.mulf %122, %123 : vector<8x128xf32>
    %cst_45 = arith.constant 4.471500e-02 : f32
    %125 = vector.broadcast %cst_45 : f32 to vector<8x128xf32>
    %126 = arith.mulf %125, %124 : vector<8x128xf32>
    %127 = arith.addf %122, %126 : vector<8x128xf32>
    %cst_46 = arith.constant 0.797884583 : f32
    %128 = vector.broadcast %cst_46 : f32 to vector<8x128xf32>
    %129 = arith.mulf %128, %127 : vector<8x128xf32>
    %130 = math.tanh %129 : vector<8x128xf32>
    %cst_47 = arith.constant 1.000000e+00 : f32
    %131 = vector.broadcast %cst_47 : f32 to vector<8x128xf32>
    %132 = arith.addf %131, %130 : vector<8x128xf32>
    %cst_48 = arith.constant 5.000000e-01 : f32
    %133 = vector.broadcast %cst_48 : f32 to vector<8x128xf32>
    %134 = arith.mulf %133, %132 : vector<8x128xf32>
    %135 = arith.mulf %122, %134 : vector<8x128xf32>
    %136 = arith.truncf %135 : vector<8x128xf32> to vector<8x128xbf16>
    %c0_49 = arith.constant 0 : index
    %c0_50 = arith.constant 0 : index
    %c0_51 = arith.constant 0 : index
    %137 = vector.load %arg12[%c0_49, %c0_50, %c0_51] : memref<1x128x32xbf16, #tpu.memory_space<vmem>>, vector<1x128x32xbf16>
    %138 = vector.shape_cast %137 : vector<1x128x32xbf16> to vector<128x32xbf16>
    %cst_52 = arith.constant dense<0.000000e+00> : vector<8x32xf32>
    %139 = tpu.matmul %136, %138, %cst_52 {dimension_numbers = #tpu.dot_dimension_numbers<[1], [0], [0], [1], [0, 0, 1, 1], [], []>} : vector<8x128xbf16>, vector<128x32xbf16>, vector<8x32xf32> -> vector<8x32xf32>
    %c0_53 = arith.constant 0 : index
    %c0_54 = arith.constant 0 : index
    %c0_55 = arith.constant 0 : index
    %140 = vector.load %arg13[%c0_53, %c0_54, %c0_55] : memref<1x1x32xf32, #tpu.memory_space<vmem>>, vector<1x1x32xf32>
    %141 = vector.shape_cast %140 : vector<1x1x32xf32> to vector<1x32xf32>
    %142 = vector.broadcast %141 : vector<1x32xf32> to vector<8x32xf32>
    %143 = arith.addf %139, %142 : vector<8x32xf32>
    %144 = arith.addf %88, %143 : vector<8x32xf32>
    %c0_56 = arith.constant 0 : index
    %c0_57 = arith.constant 0 : index
    %145 = vector.load %arg17[%c0_56, %c0_57] : memref<8x32xf32, #tpu.memory_space<vmem>>, vector<8x32xf32>
    tpu.vector_store %arg17[%c0_56, %c0_57], %144 {strides = array<i32>} : memref<8x32xf32, #tpu.memory_space<vmem>>, vector<8x32xf32>,
    %c1_i32 = arith.constant 1 : i32
    %146 = arith.cmpi eq, %arg1, %c1_i32 : i32
    %147 = arith.extui %146 : i1 to i32
    %c0_i32_58 = arith.constant 0 : i32
    %148 = arith.cmpi ne, %147, %c0_i32_58 : i32
    scf.if %148 {
      %c0_59 = arith.constant 0 : index
      %c0_60 = arith.constant 0 : index
      %149 = vector.load %arg14[%c0_59, %c0_60] : memref<1x32xf32, #tpu.memory_space<vmem>>, vector<1x32xf32>
      %c0_61 = arith.constant 0 : index
      %c0_62 = arith.constant 0 : index
      %150 = vector.load %arg15[%c0_61, %c0_62] : memref<1x32xf32, #tpu.memory_space<vmem>>, vector<1x32xf32>
      %cst_63 = arith.constant dense<0.000000e+00> : vector<8xf32>
      %151 = vector.multi_reduction <add>, %144, %cst_63 [1] : vector<8x32xf32> to vector<8xf32>
      %152 = vector.shape_cast %151 : vector<8xf32> to vector<8x1xf32>
      %cst_64 = arith.constant 3.200000e+01 : f32
      %153 = vector.broadcast %cst_64 : f32 to vector<8x1xf32>
      %154 = arith.divf %152, %153 : vector<8x1xf32>
      %155 = vector.broadcast %154 : vector<8x1xf32> to vector<8x32xf32>
      %156 = arith.subf %144, %155 : vector<8x32xf32>
      %157 = arith.mulf %156, %156 : vector<8x32xf32>
      %cst_65 = arith.constant dense<0.000000e+00> : vector<8xf32>
      %158 = vector.multi_reduction <add>, %157, %cst_65 [1] : vector<8x32xf32> to vector<8xf32>
      %159 = vector.shape_cast %158 : vector<8xf32> to vector<8x1xf32>
      %cst_66 = arith.constant 3.200000e+01 : f32
      %160 = vector.broadcast %cst_66 : f32 to vector<8x1xf32>
      %161 = arith.divf %159, %160 : vector<8x1xf32>
      %162 = vector.broadcast %154 : vector<8x1xf32> to vector<8x32xf32>
      %163 = arith.subf %144, %162 : vector<8x32xf32>
      %cst_67 = arith.constant 9.99999974E-6 : f32
      %164 = vector.broadcast %cst_67 : f32 to vector<8x1xf32>
      %165 = arith.addf %161, %164 : vector<8x1xf32>
      %166 = math.rsqrt %165 : vector<8x1xf32>
      %167 = vector.broadcast %166 : vector<8x1xf32> to vector<8x32xf32>
      %168 = arith.mulf %163, %167 : vector<8x32xf32>
      %169 = vector.broadcast %149 : vector<1x32xf32> to vector<8x32xf32>
      %170 = arith.mulf %168, %169 : vector<8x32xf32>
      %171 = vector.broadcast %150 : vector<1x32xf32> to vector<8x32xf32>
      %172 = arith.addf %170, %171 : vector<8x32xf32>
      %c0_68 = arith.constant 0 : index
      %c0_69 = arith.constant 0 : index
      %c0_70 = arith.constant 0 : index
      %173 = vector.load %arg16[%c0_68, %c0_69, %c0_70] : memref<1x8x32xf32, #tpu.memory_space<vmem>>, vector<1x8x32xf32>
      %174 = vector.shape_cast %173 : vector<1x8x32xf32> to vector<8x32xf32>
      %175 = vector.shape_cast %172 : vector<8x32xf32> to vector<1x8x32xf32>
      tpu.vector_store %arg16[%c0_68, %c0_69, %c0_70], %175 {strides = array<i32>} : memref<1x8x32xf32, #tpu.memory_space<vmem>>, vector<1x8x32xf32>,
    } else {
    }
    return
  }
  func.func @transform_0(%arg0: i32, %arg1: i32) -> (i32, i32, i32) {
    %c0_i32 = arith.constant 0 : i32
    %c0_i32_0 = arith.constant 0 : i32
    %c0_i32_1 = arith.constant 0 : i32
    return %arg0, %c0_i32, %c0_i32_0 : i32, i32, i32
  }
  func.func @transform_1(%arg0: i32, %arg1: i32) -> (i32, i32) {
    %c0_i32 = arith.constant 0 : i32
    %c0_i32_0 = arith.constant 0 : i32
    %c0_i32_1 = arith.constant 0 : i32
    return %c0_i32, %c0_i32_0 : i32, i32
  }
  func.func @transform_2(%arg0: i32, %arg1: i32) -> (i32, i32, i32) {
    %c0_i32 = arith.constant 0 : i32
    %c0_i32_0 = arith.constant 0 : i32
    %c0_i32_1 = arith.constant 0 : i32
    return %arg1, %c0_i32, %c0_i32_0 : i32, i32, i32
  }
  func.func @transform_3(%arg0: i32, %arg1: i32) -> (i32, i32, i32) {
    %c0_i32 = arith.constant 0 : i32
    %c0_i32_0 = arith.constant 0 : i32
    %c0_i32_1 = arith.constant 0 : i32
    return %arg1, %c0_i32, %c0_i32_0 : i32, i32, i32
  }
  func.func @transform_4(%arg0: i32, %arg1: i32) -> (i32, i32, i32) {
    %c0_i32 = arith.constant 0 : i32
    %c0_i32_0 = arith.constant 0 : i32
    %c0_i32_1 = arith.constant 0 : i32
    return %arg1, %c0_i32, %c0_i32_0 : i32, i32, i32
  }
  func.func @transform_5(%arg0: i32, %arg1: i32) -> (i32, i32, i32) {
    %c0_i32 = arith.constant 0 : i32
    %c0_i32_0 = arith.constant 0 : i32
    %c0_i32_1 = arith.constant 0 : i32
    return %arg1, %c0_i32, %c0_i32_0 : i32, i32, i32
  }
  func.func @transform_6(%arg0: i32, %arg1: i32) -> (i32, i32, i32) {
    %c0_i32 = arith.constant 0 : i32
    %c0_i32_0 = arith.constant 0 : i32
    %c0_i32_1 = arith.constant 0 : i32
    return %arg1, %c0_i32, %c0_i32_0 : i32, i32, i32
  }
  func.func @transform_7(%arg0: i32, %arg1: i32) -> (i32, i32, i32) {
    %c0_i32 = arith.constant 0 : i32
    %c0_i32_0 = arith.constant 0 : i32
    %c0_i32_1 = arith.constant 0 : i32
    return %arg1, %c0_i32, %c0_i32_0 : i32, i32, i32
  }
  func.func @transform_8(%arg0: i32, %arg1: i32) -> (i32, i32, i32) {
    %c0_i32 = arith.constant 0 : i32
    %c0_i32_0 = arith.constant 0 : i32
    %c0_i32_1 = arith.constant 0 : i32
    return %arg1, %c0_i32, %c0_i32_0 : i32, i32, i32
  }
  func.func @transform_9(%arg0: i32, %arg1: i32) -> (i32, i32, i32) {
    %c0_i32 = arith.constant 0 : i32
    %c0_i32_0 = arith.constant 0 : i32
    %c0_i32_1 = arith.constant 0 : i32
    return %arg1, %c0_i32, %c0_i32_0 : i32, i32, i32
  }
  func.func @transform_10(%arg0: i32, %arg1: i32) -> (i32, i32, i32) {
    %c0_i32 = arith.constant 0 : i32
    %c0_i32_0 = arith.constant 0 : i32
    %c0_i32_1 = arith.constant 0 : i32
    return %arg1, %c0_i32, %c0_i32_0 : i32, i32, i32
  }
  func.func @transform_11(%arg0: i32, %arg1: i32) -> (i32, i32, i32) {
    %c0_i32 = arith.constant 0 : i32
    %c0_i32_0 = arith.constant 0 : i32
    %c0_i32_1 = arith.constant 0 : i32
    return %arg1, %c0_i32, %c0_i32_0 : i32, i32, i32
  }
  func.func @transform_12(%arg0: i32, %arg1: i32) -> (i32, i32) {
    %c0_i32 = arith.constant 0 : i32
    %c0_i32_0 = arith.constant 0 : i32
    %c0_i32_1 = arith.constant 0 : i32
    return %c0_i32, %c0_i32_0 : i32, i32
  }
  func.func @transform_13(%arg0: i32, %arg1: i32) -> (i32, i32) {
    %c0_i32 = arith.constant 0 : i32
    %c0_i32_0 = arith.constant 0 : i32
    %c0_i32_1 = arith.constant 0 : i32
    return %c0_i32, %c0_i32_0 : i32, i32
  }
  func.func @transform_14(%arg0: i32, %arg1: i32) -> (i32, i32, i32) {
    %c0_i32 = arith.constant 0 : i32
    %c0_i32_0 = arith.constant 0 : i32
    %c0_i32_1 = arith.constant 0 : i32
    return %arg0, %c0_i32, %c0_i32_0 : i32, i32, i32
  }
}

</mosaic_0001>

<bundles_post_ra>
// kernel: tpu_custom_call.1
= control target key start
LH: loop header
LB: loop body
LE: loop exit
PB: predicated region body
PF: predicated region fallthrough
CT: control target
= control target key end

     0   :  { %s2384_s0 = inlined_call_operand.vmem [shape: s32[2,8,4], index: 0, kind: input, shape index: {}]   ;;  %s2385_s1 = inlined_call_operand.vmem [shape: bf16[64,32], index: 1, kind: input, shape index: {}]   ;;  %s2386_s2 = inlined_call_operand.vmem [shape: f32[2,1,32], index: 2, kind: input, shape index: {}]   ;;  %s2387_s3 = inlined_call_operand.vmem [shape: f32[2,1,32], index: 3, kind: input, shape index: {}]   ;;  %s2388_s4 = inlined_call_operand.vmem [shape: bf16[2,32,96], index: 4, kind: input, shape index: {}]   ;;  %s2389_s5 = inlined_call_operand.vmem [shape: bf16[2,32,32], index: 5, kind: input, shape index: {}]   ;;  %s2390_s6 = inlined_call_operand.vmem [shape: f32[2,1,32], index: 6, kind: input, shape index: {}]   ;;  %s2391_s7 = inlined_call_operand.vmem [shape: f32[2,1,32], index: 7, kind: input, shape index: {}]   ;;  %s2392_s8 = inlined_call_operand.vmem [shape: bf16[2,32,128], index: 8, kind: input, shape index: {}]   ;;  %s2393_s9 = inlined_call_operand.vmem [shape: f32[2,1,128], index: 9, kind: input, shape index: {}]   ;;  %s2394_s10 = inlined_call_operand.vmem [shape: bf16[2,128,32], index: 10, kind: input, shape index: {}]   ;;  %s2395_s11 = inlined_call_operand.vmem [shape: f32[2,1,32], index: 11, kind: input, shape index: {}]   ;;  %s2396_s12 = inlined_call_operand.vmem [shape: f32[1,32], index: 12, kind: input, shape index: {}]   ;;  %s2397_s13 = inlined_call_operand.vmem [shape: f32[1,32], index: 13, kind: input, shape index: {}]   ;;  %s2398_s14 = inlined_call_operand.hbm [shape: f32[2,8,32], index: 14, kind: output, shape index: {}]  }
   0x1   :  { %2414 = sst [smem:[#allocation18_spill]] %s2384_s0 }
   0x2   :  { %2415 = sst [smem:[#allocation19_spill]] %s2385_s1 }
   0x3   :  { %2416 = sst [smem:[#allocation20_spill]] %s2388_s4 }
   0x4   :  { %2417 = sst [smem:[#allocation21_spill]] %s2389_s5 }
   0x5   :  { %2418 = sst [smem:[#allocation22_spill]] %s2396_s12 }
   0x6   :  { %2419 = sst [smem:[#allocation23_spill]] %s2397_s13 }
   0x7   :  { %2420 = sst [smem:[#allocation24_spill]] %s2398_s14 }
   0x8   :  { %19 = vsyncpa [#allocation4], 0 }
   0x9   :  { %21 = vsyncpa [#allocation4 + $0x1], 0  ;;  %s2067_s29 = smov 0   ;;  %s2069_s30 = smov 0  }
   0xa   :  { %s2071_s15 = smov 0   ;;  %s2073_s16 = smov 0  }
   0xb   :  { %s2075_s17 = smov 0   ;;  %s2077_s18 = smov 0  }
   0xc   :  { %s2079_s19 = smov 0   ;;  %s2081_s20 = smov 0  }
   0xd LB: > { %2421 = sst [smem:[#allocation6_spill]] %s1948_s29  ;;  %s1585_s21 = sadd.s32 4294967295, %s1976_s20   ;;  %s1976_s20 = sphi %s2081_s20, %s27_s20   ;;  %s1972_s19 = sphi %s2079_s19, %s2459_s19   ;;  %s1968_s18 = sphi %s2077_s18, %s2458_s18   ;;  %s1964_s17 = sphi %s2075_s17, %s2457_s17   ;;  %s1960_s16 = sphi %s2073_s16, %s2456_s16   ;;  %s1956_s15 = sphi %s2071_s15, %s2455_s15   ;;  %s1952_s30 = sphi %s2069_s30, %s2454_s30   ;;  %s1948_s29 = sphi %s2067_s29, %s2453_s29  }
   0xe   : > { %2422 = sst [smem:[#allocation7_spill]] %s1952_s30  ;;  %s1586_s22 = sadd.s32 4294967294, %s1976_s20  }
   0xf   : > { %2423 = sst [smem:[#allocation8_spill]] %s1956_s15  ;;  %s36_s23 = sadd.s32 1, %s1968_s18 }
  0x10   : > { %2424 = sst [smem:[#allocation9_spill]] %s1964_s17  ;;  %p37_p0 = scmp.ge.s32.totalorder %s36_s23, 2 }
  0x11   : > { %2425 = sst [smem:[#allocation10_spill]] %s1968_s18  ;;  %s39_s24 = sadd.s32 1, %s1972_s19 }
  0x12   : > { %2426 = sst [smem:[#allocation11_spill]] %s1972_s19  ;;  %p405_p1 = scmp.ne.s32.totalorder %s1956_s15, %s1952_s30 }
  0x13   : > { %2427 = sst [smem:[#allocation12_spill]] %s1976_s20  ;;  %p406_p2 = scmp.eq.s32.totalorder %s1585_s21, 3 }
  0x14   : > { %s2461_s23 = smov (%p37_p0, %s36_s23), 0  ;;  %s2463_s24 = smov (!%p37_p0, %s39_s24), %s1972_s19 }
  0x15   : > { %2428 = sst [smem:[#allocation13_spill]] %s2461_s23  ;;  %p2116_p3 = por %p406_p2, %p405_p1 }
  0x16   : > { %p411_p4 = scmp.ne.s32.totalorder %s1952_s30, %s1948_s29  ;;  %p41_p5 = scmp.ge.s32.totalorder %s2463_s24, 2 }
  0x17   : > { %s2429_s25 = scalar_select %p2116_p3, 1, 0 }
  0x18   : > { %p412_p6 = scmp.eq.s32.totalorder %s1586_s22, 3  ;;  %p1589_p7 = scmp.ge.s32.totalorder %s1976_s20, 1 }
  0x19   : > { %2430 = sst [smem:[#allocation14_spill]] %s2429_s25  ;;  %p514_p8 = scmp.lt.s32.totalorder %s1976_s20, 5 }
  0x1a   : > { %s2465_s24 = smov (%p41_p5, %s2463_s24), 0  ;;  %p2126_p9 = por %p412_p6, %p411_p4 }
  0x1b   : > { %2431 = sst [smem:[#allocation15_spill]] %s2465_s24  ;;  %p515_p10 = pnand %p1589_p7, %p514_p8 }
  0x1c   : > { %s2432_s26 = scalar_select %p2126_p9, 1, 0 }
  0x1d   : > { %s392_s27 = ssub.s32 %s1972_s19, %s2465_s24  ;;  %s395_s28 = sadd.s32 1, %s1956_s15 }
  0x1e   : > { %2433 = sst [smem:[#allocation16_spill]] %s2432_s26  ;;  %p393_p11 = scmp.eq.s32.totalorder %s392_s27, 0 }
  0x1f   : > { %518 = sbr.rel (%p515_p10) target bundleno = 3361 (0xd21), region = 76  ;;  %s2402_s22 = sand.u32 (!%p515_p10), 1, %s1952_s30  }
  0x20   : > { %s2134_s21 = scalar_select %p393_p11, %s1956_s15, %s395_s28  }
  0x21   : > { %p597_p12 = scmp.lt.s32.totalorder (!%p515_p10), %s1964_s17, 1  ;;  %s2140_s23 = sshll.u32 (!%p515_p10), %s2402_s22, 3 }
  0x22   : > { %2434 = sst [smem:[#allocation17_spill]] %s2134_s21  ;;  %p601_p13 = scmp.lt.s32.totalorder (!%p515_p10), %s1960_s16, 1 }
  0x23   : > { %s2435_s0 = sld [smem:[#allocation18_spill]] (!%p515_p10)  ;;  %s2436_s4 = sld [smem:[#allocation20_spill]] (!%p515_p10) }
  0x24   : > { %s2437_s5 = sld [smem:[#allocation21_spill]] (!%p515_p10)  ;;  %s596_s22 = scalar_lea.vmem (!%p515_p10), [#allocation3], %s2140_s23 }
  0x25   : > { %p1600_p0 = scmp.ne.s32.totalorder (!%p515_p10), %s1960_s16, 0 }
  0x26   : > { %s598_s18 = scalar_select %p597_p12, %s1964_s17, 1 }
  0x27   : > { %s2145_s24 = scalar_select %p601_p13, %s1960_s16, 1 }
  0x28   : > { %s1591_s27 = sshll.u32 %s598_s18, 3  ;;  %643 = sbr.rel (%p1600_p0) target bundleno = 401 (0x191), region = 80  ;;  %v1978_v2 = vmov (!%p1600_p0), 0   ;;  %v1979_v3 = vmov (!%p1600_p0), 2   ;;  %v1980_v4 = vmov (!%p1600_p0), 0.0   ;;  %v1981_v6 = vmov (!%p1600_p0), 1  }
  0x29   : > { %s600_s21 = scalar_lea.vmem %s2435_s0, %s1591_s27  ;;  %s1644_s25 = sshll.u32 %s2145_s24, 4  ;;  %1843 = vset.pattern.permute.xlu0 (!%p1600_p0), %v1978_v2  ;;  %1845 = vset.pattern.permute.xlu1 (!%p1600_p0), %v1979_v3  ;;  %v1982_v7 = vmov (!%p1600_p0), 3   ;;  %vm1983_vm0 = vmmov (!%p1600_p0), 0   ;;  %v645_v10 = vlaneseq (!%p1600_p0)  ;;  %vm708_vm5 = vcmask (!%p1600_p0), 523264  }
  0x2a   : > { %s2162_s13 = scalar_lea.vmem %s2436_s4, %s1644_s25  ;;  %s2167_s1 = scalar_lea.vmem %s2437_s5, %s1644_s25  ;;  %v644_v0 = vld [vmem:[%s600_s21] sm:$0xff] (!%p1600_p0)  ;;  %1679 = vmatprep.subr.bf16.mxu0 (!%p1600_p0), %v1980_v4  ;;  %1687 = vmatprep.mubr.msk.bf16.mxu0 (!%p1600_p0), %vm1983_vm0, %v1980_v4  ;;  %vm752_vm6 = vcmask (!%p1600_p0), 261120  }
  0x2b   : > { %s622_s29 = scalar_lea.vmem %s2391_s7, %s2145_s24  ;;  %s2180_s26 = scalar_lea.vmem %s2392_s8, %s1644_s25  ;;  %648 = vperm.xlu0 (!%p1600_p0), %1843, %v644_v0   ;;  %662 = vperm.xlu1 (!%p1600_p0), %1845, %v644_v0   ;;  %v646_v11 = vand.u32 (!%p1600_p0), 127, %v645_v10 }
  0x2c   : > { %s630_s0 = scalar_lea.vmem %s2393_s9, %s2145_s24  ;;  %s1647_s12 = sshll.u32 %s2145_s24, 6 }
  0x2d   : > { %s638_s5 = scalar_lea.vmem %s2395_s11, %s2145_s24  ;;  %s2194_s15 = scalar_lea.vmem %s2394_s10, %s1647_s12 }
  0x2e   : > { %s2438_s28 = sld [smem:[#allocation19_spill]] (!%p1600_p0) }
  0x2f   : > { %1844 = vset.pattern.permute.xlu0 %v1981_v6  ;;  %1846 = vset.pattern.permute.xlu1 %v1982_v7 }
  0x30   : > { %655 = vperm.xlu0 %1844, %v644_v0   ;;  %669 = vperm.xlu1 %1846, %v644_v0  }
  0x34   : > { %v1848_v1 = vld [vmem:[%s2438_s28] sm:$0xff]   ;;  %v1849_v5 = vld [vmem:[%s2438_s28 + $0x8] sm:$0xff]   ;;  %v1850_v8 = vld [vmem:[%s2438_s28 + $0x10] sm:$0xff]   ;;  %1847 = vset.pattern.permute.xlu0 %v1982_v7 }
  0x35   : > { %1680 = vmatpush3.bf16.msra.mxu0 %v1848_v1  ;;  %v1851_v9 = vld [vmem:[%s2438_s28 + $0x18] sm:$0xff]  }
  0x36   : > { %1681 = vmatprep.subr.bf16.mxu0 %v1980_v4 }
  0x39   : > { %1682 = vmatpush3.bf16.msra.mxu0 %v1849_v5 }
  0x3a   : > { %1683 = vmatprep.subr.bf16.mxu0 %v1980_v4 }
  0x3d   : > { %1684 = vmatpush3.bf16.msra.mxu0 %v1850_v8 }
  0x3e   : > { %1685 = vmatprep.subr.bf16.mxu0 %v1980_v4 }
  0x41   : > { %1686 = vmatpush3.bf16.msra.mxu0 %v1851_v9 }
  0xaa   : > { %v649_v12 = vpop.permute.xlu0 %648  ;;  %v663_v13 = vpop.permute.xlu1 %662 }
  0xab   : > { %vm650_vm1 = vcmp.eq.s32.totalorder %v649_v12, %v646_v11  ;;  %vm664_vm2 = vcmp.eq.s32.totalorder %v663_v13, %v646_v11 }
  0xac   : > { %v1601_v16 = vsel %vm650_vm1, 1.0, %v1980_v4  ;;  %v1603_v19 = vsel %vm664_vm2, 1.0, %v1980_v4 }
  0xaf   : > { %v656_v14 = vpop.permute.xlu0 %655  ;;  %v670_v15 = vpop.permute.xlu1 %669 }
  0xb0   : > { %vm657_vm3 = vcmp.eq.s32.totalorder %v656_v14, %v646_v11  ;;  %vm671_vm4 = vcmp.eq.s32.totalorder %v670_v15, %v646_v11 }
  0xb1   : > { %v1602_v17 = vsel %vm657_vm3, 1.0, %v1980_v4  ;;  %v1604_v20 = vsel %vm671_vm4, 1.0, %v1980_v4 }
  0xb2   : > { %v660_v18 = vadd.f32 %v1602_v17, %v1601_v16 }
  0xb4   : > { %v667_v21 = vadd.f32 %v1603_v19, %v660_v18 }
  0xb6   : > { %v674_v22 = vadd.f32 %v1604_v20, %v667_v21 }
  0xb8   : > { %v675_v23 = vpack.c.bf16 %v674_v22, %v674_v22 }
  0xba   : > { %1688 = vmatmul.mubr.msk.bf16.vlgmr.msra.gmra.mrb[0].mxu0 %vm708_vm5, %v675_v23 }
 0x18d   : > { %v746_v24 = vpop.f32.mrb[0].mxu0 }
 0x18e   : > { %753 = vst.msk [vmem:[#allocation2] sm:$0xff] %vm752_vm6, %v746_v24  ;;  %v1689_v25 = vpop.f32.mrb[1].mxu0 }
 0x18f   : > { %v749_v26 = vpop.f32.mrb[2].mxu0 }
 0x190   : > { %v1690_v27 = vpop.f32.mrb[3].mxu0 }
 0x191 PF: > { %vm763_vm7 = vcmask 261120   ;;  %v1852_v35 = vld [vmem:[%s2162_s13] sm:$0xff]   ;;  %v1984_v36 = vmov 0.0   ;;  %vm1985_vm8 = vmmov 0   ;;  %v1853_v37 = vld [vmem:[%s2162_s13 + $0x8] sm:$0xff]   ;;  %s2439_s27 = scalar_lea.vmem %s2386_s2, %s2145_s24  ;;  %s2440_s25 = scalar_lea.vmem %s2387_s3, %s2145_s24  ;;  %vm863_vm9 = vcmask 130048  }
 0x192   : > { %1691 = vmatprep.subr.bf16.mxu0 %v1984_v36  ;;  %1695 = vmatprep.mubr.msk.bf16.mxu0 %vm1985_vm8, %v1984_v36  ;;  %v1610_v42 = vld [vmem:[%s2439_s27] ss:$0 sm:$0xff]  ;;  %s1986_s4 = smov 112   ;;  %s1987_s20 = smov 96   ;;  %v755_v61 = vlaneseq  ;;  %v1988_v0 = vmov -1e+30  }
 0x193   : > { %1692 = vmatpush3.bf16.msra.mxu0 %v1852_v35  ;;  %1711 = vmatprep.subr.bf16.mxu1 %v1984_v36  ;;  %v1611_v44 = vld [vmem:[%s2440_s25] ss:$0 sm:$0xff]  ;;  %vm958_vm11 = vcmask 64512   ;;  %s1989_s21 = smov 64   ;;  %vm988_vm12 = vcmask 1043456   ;;  %s1990_s30 = smov 16  }
 0x194   : > { %1693 = vmatprep.subr.bf16.mxu0 %v1984_v36  ;;  %1713 = vmatprep.mubr.msk.bf16.mxu1 %vm1985_vm8, %v1984_v36  ;;  %v756_v62 = vshrl.u32 %v755_v61, 7  ;;  %v758_v63 = vand.u32 127, %v755_v61  ;;  %s2441_s12 = scalar_lea.vmem %s2390_s6, %s2145_s24  ;;  %p1637_p1 = scmp.ne.s32.totalorder %s1960_s16, 1 }
 0x195   : > { %v2210_v28 = vld [vmem:[#allocation2] sm:$0xff]  ;;  %s2442_s16 = sld [smem:[#allocation22_spill]] (!%p1637_p1)  ;;  %s2443_s14 = sld [smem:[#allocation23_spill]] (!%p1637_p1) }
 0x196   : > { %v764_v29 = vsel %vm763_vm7, %v2210_v28, 0.0  ;;  %vm759_vm10 = vcmp.le.s32.totalorder %v758_v63, %v756_v62  ;;  %v1856_v62 = vld [vmem:[%s2180_s26] sm:$0xff]  }
 0x197   : > { %765 = vadd.xlane.f32.xlu0 %v764_v29  ;;  %1694 = vmatpush3.bf16.msra.mxu0 %v1853_v37  ;;  %v760_v1 = vsel %vm759_vm10, 0.0, %v1988_v0 }
 0x198   : > { %1699 = vmatprep.subr.bf16.mxu0 %v1984_v36 }
 0x224   : > { %v766_v30 = vpop.xlane.xlu0 %765 }
 0x225   : > { %v768_v31 = vmul.f32 0.03125, %v766_v30 }
 0x227   : > { %v769_v32 = vsub.f32 %v2210_v28, %v768_v31 }
 0x229   : > { %v770_v33 = vmul.f32 %v769_v32, %v769_v32 }
 0x22b   : > { %v771_v34 = vsel %vm763_vm7, %v770_v33, 0.0 }
 0x22c   : > { %772 = vadd.xlane.f32.xlu0 %v771_v34 }
 0x2b9   : > { %v773_v38 = vpop.xlane.xlu0 %772 }
 0x2ba   : > { %v774_v39 = vmul.f32 0.03125, %v773_v38  ;;  %v1854_v38 = vld [vmem:[%s2167_s1] sm:$0xff]  }
 0x2bc   : > { %v775_v40 = vadd.f32 1e-05, %v774_v39 }
 0x2be   : > { %1866 = vrsqrt.f32 %v775_v40 }
 0x2c8   : > { %v1867_v41 = vpop.eup %1866 }
 0x2c9   : > { %v777_v43 = vmul.f32 %v1867_v41, %v769_v32 }
 0x2cb   : > { %v784_v45 = vmul.f32 %v1610_v42, %v777_v43  ;;  %v1855_v43 = vld [vmem:[%s2167_s1 + $0x8] sm:$0xff]  }
 0x2cd   : > { %v791_v46 = vadd.f32 %v1611_v44, %v784_v45 }
 0x2cf   : > { %v792_v47 = vpack.c.bf16 %v791_v46, %v791_v46 }
 0x2d1   : > { %1696 = vmatmul.mubr.msk.bf16.vlgmr.msra.gmra.mrb[0].mxu0 %vm763_vm7, %v792_v47 }
 0x2d2   : > { %1701 = vmatprep.mubr.msk.bf16.mxu0 %vm1985_vm8, %v1984_v36 }
 0x3a4   : > { %v846_v48 = vpop.f32.mrb[0].mxu0 }
 0x3a5   : > { %v857_v49 = vpack.c.bf16 %v846_v48, %v846_v48  ;;  %v1697_v50 = vpop.f32.mrb[1].mxu0  ;;  %v852_v53 = vmul.f32 0.25, %v846_v48 }
 0x3a6   : > { %v849_v51 = vpop.f32.mrb[2].mxu0 }
 0x3a7   : > { %859 = vrot.lane.b32.xlu1 %v857_v49, %s1986_s4  ;;  %v1698_v52 = vpop.f32.mrb[3].mxu0  ;;  %v853_v54 = vpack.c.bf16 %v852_v53, %v852_v53 }
 0x3ab   : > { %861 = vrot.lane.b32.xlu1 %v857_v49, %s1987_s20 }
 0x3af   : > { %855 = vrot.lane.b32.xlu1 %v853_v54, %s1986_s4 }
 0x419   : > { %v860_v55 = vpop.permute.xlu1 %859 }
 0x41a   : > { %910 = vrot.lane.b32.xlu0 %v860_v55, %s1987_s20 }
 0x41d   : > { %v862_v56 = vpop.permute.xlu1 %861 }
 0x41e   : > { %v868_v57 = vsel %vm863_vm9, %v862_v56, 0 }
 0x41f   : > { %1700 = vmatpush3.bf16.xpose.msra.mxu0 %v868_v57 }
 0x420   : > { %1705 = vmatprep.subr.bf16.mxu0 %v1984_v36 }
 0x421   : > { %v856_v60 = vpop.permute.xlu1 %855 }
 0x426   : > { %1702 = vmatmul.mubr.msk.bf16.vlgmr.msra.gmra.mrb[4].mxu0 %vm863_vm9, %v853_v54 }
 0x427   : > { %1707 = vmatprep.mubr.msk.bf16.mxu0 %vm1985_vm8, %v1984_v36 }
 0x48c   : > { %v911_v58 = vpop.permute.xlu0 %910 }
 0x48d   : > { %v916_v59 = vsel %vm863_vm9, %v911_v58, 0 }
 0x48e   : > { %1706 = vmatpush3.bf16.xpose.msra.mxu0 %v916_v59 }
 0x48f   : > { %1717 = vmatprep.subr.bf16.mxu0 %v1984_v36 }
 0x495   : > { %1708 = vmatmul.mubr.msk.bf16.vlgmr.msra.gmra.mrb[8].mxu0 %vm863_vm9, %v856_v60 }
 0x496   : > { %1719 = vmatprep.mubr.msk.bf16.mxu0 %vm1985_vm8, %v1984_v36 }
 0x4f9   : > { %v904_v2 = vpop.f32.mrb[4].mxu0 }
 0x4fa   : > { %v905_v3 = vadd.f32 %v904_v2, %v760_v1  ;;  %v1703_v4 = vpop.f32.mrb[5].mxu0 }
 0x4fb   : > { %v907_v5 = vpop.f32.mrb[6].mxu0 }
 0x4fc   : > { %v1704_v6 = vpop.f32.mrb[7].mxu0  ;;  %v959_v7 = vsel %vm958_vm11, %v905_v3, -inf  ;;  %v1623_v5 = vld [vmem:[%s622_s29] ss:$0 sm:$0xff] }
 0x4fd   : > { %960 = vmax.xlane.f32.xlu0 %v959_v7 }
 0x568   : > { %v952_v8 = vpop.f32.mrb[8].mxu0 }
 0x569   : > { %v953_v9 = vadd.f32 %v952_v8, %v760_v1  ;;  %v1709_v10 = vpop.f32.mrb[9].mxu0 }
 0x56a   : > { %v955_v11 = vpop.f32.mrb[10].mxu0  ;;  %v1859_v10 = vld [vmem:[%s2194_s15 + $0x8] sm:$0xff]  }
 0x56b   : > { %v1710_v12 = vpop.f32.mrb[11].mxu0  ;;  %v962_v13 = vsel %vm958_vm11, %v953_v9, -inf  ;;  %v1860_v11 = vld [vmem:[%s2194_s15 + $0x10] sm:$0xff]  }
 0x56c   : > { %963 = vmax.xlane.f32.xlu1 %v962_v13  ;;  %v1861_v12 = vld [vmem:[%s2194_s15 + $0x18] sm:$0xff]   ;;  %v1862_v13 = vld [vmem:[%s2194_s15 + $0x20] sm:$0xff]  }
 0x58a   : > { %v961_v14 = vpop.xlane.xlu0 %960 }
 0x58b   : > { %v965_v15 = vsub.f32 %v905_v3, %v961_v14  ;;  %v1622_v3 = vld [vmem:[%s2441_s12] ss:$0 sm:$0xff]  ;;  %v1863_v14 = vld [vmem:[%s2194_s15 + $0x28] sm:$0xff]  }
 0x58d   : > { %v967_v16 = vmul.f32 1.442695, %v965_v15  ;;  %v1864_v15 = vld [vmem:[%s2194_s15 + $0x30] sm:$0xff]  }
 0x58f   : > { %1868 = vpow2.f32 %v967_v16  ;;  %v1865_v16 = vld [vmem:[%s2194_s15 + $0x38] sm:$0xff]  }
 0x599   : > { %v1869_v17 = vpop.eup %1868 }
 0x59a   : > { %v971_v18 = vsel %vm958_vm11, %v1869_v17, 0.0 }
 0x59b   : > { %972 = vadd.xlane.f32.xlu0 %v971_v18 }
 0x5b1   : > { %983 = vrot.lane.b32.xlu0 %v857_v49, %s1989_s21 }
 0x5f9   : > { %v964_v19 = vpop.xlane.xlu1 %963 }
 0x5fa   : > { %v966_v20 = vsub.f32 %v953_v9, %v964_v19  ;;  %v1858_v9 = vld [vmem:[%s2194_s15] sm:$0xff]  }
 0x5fc   : > { %v969_v21 = vmul.f32 1.442695, %v966_v20 }
 0x5fe   : > { %1870 = vpow2.f32 %v969_v21 }
 0x608   : > { %v1871_v22 = vpop.eup %1870 }
 0x609   : > { %v974_v23 = vsel %vm958_vm11, %v1871_v22, 0.0 }
 0x60a   : > { %975 = vadd.xlane.f32.xlu1 %v974_v23 }
 0x61b   : > { %1032 = vrot.lane.b32.xlu1 %v860_v55, %s1989_s21 }
 0x628   : > { %v973_v24 = vpop.xlane.xlu0 %972 }
 0x629   : > { %1872 = vrcp.f32 %v973_v24 }
 0x62c   : > { %v984_v25 = vpop.permute.xlu0 %983 }
 0x62d   : > { %v990_v26 = vsel %vm988_vm12, %v984_v25, 0 }
 0x62e   : > { %1712 = vmatpush3.bf16.msra.mxu1 %v990_v26 }
 0x62f   : > { %1723 = vmatprep.subr.bf16.mxu1 %v1984_v36 }
 0x633   : > { %v1873_v27 = vpop.eup %1872 }
 0x634   : > { %v979_v29 = vmul.f32 %v1873_v27, %v1869_v17  ;;  %v1624_v17 = vld [vmem:[%s630_s0] ss:$0 sm:$0xff] }
 0x636   : > { %v981_v30 = vpack.c.bf16 %v979_v29, %v979_v29 }
 0x638   : > { %1714 = vmatmul.mubr.msk.bf16.vlgmr.msra.gmra.mrb[0].mxu1 %vm958_vm11, %v981_v30 }
 0x639   : > { %1727 = vmatprep.mubr.msk.bf16.mxu1 %vm1985_vm8, %v1984_v36  ;;  %1724 = vmatpush3.bf16.msra.mxu1 %v1854_v38 }
 0x63a   : > { %1725 = vmatprep.subr.bf16.mxu1 %v1984_v36 }
 0x63d   : > { %1726 = vmatpush3.bf16.msra.mxu1 %v1855_v43 }
 0x63e   : > { %1739 = vmatprep.subr.bf16.mxu1 %v1984_v36 }
 0x697   : > { %v976_v31 = vpop.xlane.xlu1 %975 }
 0x698   : > { %1874 = vrcp.f32 %v976_v31 }
 0x69b   : > { %v1033_v32 = vpop.permute.xlu1 %1032 }
 0x69c   : > { %v1038_v33 = vsel %vm988_vm12, %v1033_v32, 0 }
 0x69d   : > { %1718 = vmatpush3.bf16.msra.mxu0 %v1038_v33  ;;  %v1628_v33 = vld [vmem:[%s638_s5] ss:$0 sm:$0xff] }
 0x69e   : > { %1731 = vmatprep.subr.bf16.mxu0 %v1984_v36 }
 0x6a2   : > { %v1875_v34 = vpop.eup %1874 }
 0x6a3   : > { %v980_v35 = vmul.f32 %v1875_v34, %v1871_v22 }
 0x6a5   : > { %v982_v37 = vpack.c.bf16 %v980_v35, %v980_v35 }
 0x6a7   : > { %1720 = vmatmul.mubr.msk.bf16.vlgmr.msra.gmra.mrb[12].mxu0 %vm958_vm11, %v982_v37 }
 0x6a8   : > { %1735 = vmatprep.mubr.msk.bf16.mxu0 %vm1985_vm8, %v1984_v36  ;;  %1732 = vmatpush3.bf16.msra.mxu0 %v1856_v62 }
 0x6a9   : > { %1733 = vmatprep.subr.bf16.mxu0 %v1984_v36 }
 0x70b   : > { %v1026_v39 = vpop.f32.mrb[0].mxu1 }
 0x70c   : > { %v1715_v40 = vpop.f32.mrb[1].mxu1 }
 0x70d   : > { %v1029_v41 = vpop.f32.mrb[2].mxu1 }
 0x70e   : > { %v1716_v42 = vpop.f32.mrb[3].mxu1 }
 0x77a   : > { %v1074_v44 = vpop.f32.mrb[12].mxu0 }
 0x77b   : > { %1081 = vrot.lane.b32.xlu1 %v1074_v44, %s1990_s30  ;;  %v1721_v45 = vpop.f32.mrb[13].mxu0 }
 0x77c   : > { %v1077_v46 = vpop.f32.mrb[14].mxu0 }
 0x77d   : > { %v1722_v47 = vpop.f32.mrb[15].mxu0 }
 0x7ed   : > { %v1082_v48 = vpop.permute.xlu1 %1081 }
 0x7ee   : > { %v1084_v49 = vsel %vm863_vm9, %v1026_v39, %v1082_v48 }
 0x7ef   : > { %v1085_v50 = vpack.c.bf16 %v1084_v49, %v1084_v49 }
 0x7f1   : > { %1728 = vmatmul.mubr.msk.bf16.vlgmr.msra.gmra.mrb[4].mxu1 %vm763_vm7, %v1085_v50 }
 0x7f2   : > { %1755 = vmatprep.mubr.msk.bf16.mxu1 %vm1985_vm8, %v1984_v36  ;;  %1740 = vmatpush3.bf16.msra.mxu1 %v1858_v9 }
 0x7f3   : > { %1741 = vmatprep.subr.bf16.mxu1 %v1984_v36 }
 0x7f6   : > { %1742 = vmatpush3.bf16.msra.mxu1 %v1859_v10 }
 0x7f7   : > { %1743 = vmatprep.subr.bf16.mxu1 %v1984_v36 }
 0x7fa   : > { %1744 = vmatpush3.bf16.msra.mxu1 %v1860_v11 }
 0x7fb   : > { %1745 = vmatprep.subr.bf16.mxu1 %v1984_v36 }
 0x7fe   : > { %1746 = vmatpush3.bf16.msra.mxu1 %v1861_v12 }
 0x7ff   : > { %1747 = vmatprep.subr.bf16.mxu1 %v1984_v36 }
 0x802   : > { %1748 = vmatpush3.bf16.msra.mxu1 %v1862_v13 }
 0x803   : > { %1749 = vmatprep.subr.bf16.mxu1 %v1984_v36 }
 0x806   : > { %1750 = vmatpush3.bf16.msra.mxu1 %v1863_v14 }
 0x807   : > { %1751 = vmatprep.subr.bf16.mxu1 %v1984_v36 }
 0x80a   : > { %1752 = vmatpush3.bf16.msra.mxu1 %v1864_v15 }
 0x80b   : > { %1753 = vmatprep.subr.bf16.mxu1 %v1984_v36 }
 0x80e   : > { %1754 = vmatpush3.bf16.msra.mxu1 %v1865_v16 }
 0x8c4   : > { %v1139_v51 = vpop.f32.mrb[4].mxu1 }
 0x8c5   : > { %v2270_v52 = vadd.f32 %v1139_v51, %v2210_v28  ;;  %v1729_v53 = vpop.f32.mrb[5].mxu1  ;;  %v1857_v28 = vld [vmem:[%s2180_s26 + $0x8] sm:$0xff]   ;;  %v1638_v51 = vld [vmem:[%s2442_s16] ss:$0 sm:$0xff] (!%p1637_p1) }
 0x8c6   : > { %v1142_v54 = vpop.f32.mrb[6].mxu1  ;;  %1734 = vmatpush3.bf16.msra.mxu0 %v1857_v28  ;;  %v1639_v53 = vld [vmem:[%s2443_s14] ss:$0 sm:$0xff] (!%p1637_p1) }
 0x8c7   : > { %v1730_v55 = vpop.f32.mrb[7].mxu1  ;;  %v1148_v56 = vsel %vm763_vm7, %v2270_v52, 0.0 }
 0x8c8   : > { %1149 = vadd.xlane.f32.xlu1 %v1148_v56 }
 0x955   : > { %v1150_v57 = vpop.xlane.xlu1 %1149 }
 0x956   : > { %v1151_v58 = vmul.f32 0.03125, %v1150_v57 }
 0x958   : > { %v1152_v59 = vsub.f32 %v2270_v52, %v1151_v58 }
 0x95a   : > { %v1153_v60 = vmul.f32 %v1152_v59, %v1152_v59 }
 0x95c   : > { %v1154_v61 = vsel %vm763_vm7, %v1153_v60, 0.0 }
 0x95d   : > { %1155 = vadd.xlane.f32.xlu0 %v1154_v61 }
 0x9ea   : > { %v1156_v63 = vpop.xlane.xlu0 %1155 }
 0x9eb   : > { %v1157_v0 = vmul.f32 0.03125, %v1156_v63 }
 0x9ed   : > { %v1158_v1 = vadd.f32 1e-05, %v1157_v0 }
 0x9ef   : > { %1876 = vrsqrt.f32 %v1158_v1 }
 0x9f9   : > { %v1877_v2 = vpop.eup %1876 }
 0x9fa   : > { %v1160_v4 = vmul.f32 %v1877_v2, %v1152_v59 }
 0x9fc   : > { %v1167_v6 = vmul.f32 %v1622_v3, %v1160_v4 }
 0x9fe   : > { %v1174_v7 = vadd.f32 %v1623_v5, %v1167_v6 }
 0xa00   : > { %v1175_v8 = vpack.c.bf16 %v1174_v7, %v1174_v7 }
 0xa02   : > { %1736 = vmatmul.mubr.msk.bf16.vlgmr.msra.gmra.mrb[16].mxu0 %vm763_vm7, %v1175_v8 }
 0xad5   : > { %v1236_v18 = vpop.f32.mrb[16].mxu0 }
 0xad6   : > { %v1237_v19 = vadd.f32 %v1624_v17, %v1236_v18  ;;  %v1737_v20 = vpop.f32.mrb[17].mxu0 }
 0xad7   : > { %v1239_v21 = vpop.f32.mrb[18].mxu0 }
 0xad8   : > { %v1242_v22 = vmul.f32 %v1237_v19, %v1237_v19  ;;  %v1738_v23 = vpop.f32.mrb[19].mxu0 }
 0xada   : > { %v1243_v24 = vmul.f32 %v1242_v22, %v1237_v19 }
 0xadc   : > { %v1244_v25 = vmul.f32 0.044715, %v1243_v24 }
 0xade   : > { %v1245_v26 = vadd.f32 %v1244_v25, %v1237_v19 }
 0xae0   : > { %v1246_v27 = vmul.f32 0.7978846, %v1245_v26 }
 0xae2   : > { %1878 = vtanh.f32 %v1246_v27 }
 0xaec   : > { %v1879_v29 = vpop.eup %1878 }
 0xaed   : > { %v1248_v36 = vadd.f32 1.0, %v1879_v29 }
 0xaef   : > { %v1249_v30 = vmul.f32 0.5, %v1248_v36 }
 0xaf1   : > { %v1250_v31 = vmul.f32 %v1249_v30, %v1237_v19 }
 0xaf3   : > { %v1251_v32 = vpack.c.bf16 %v1250_v31, %v1250_v31 }
 0xaf5   : > { %1756 = vmatmul.mubr.bf16.vlgmr.msra.gmra.mrb[8].mxu1 %v1251_v32 }
 0xbc7   : > { %1368 = sbr.rel (%p1637_p1) target bundleno = 3335 (0xd07), region = 84 }
 0xbc8   : > { %v1357_v34 = vpop.f32.mrb[8].mxu1 }
 0xbc9   : > { %v1358_v35 = vadd.f32 %v1628_v33, %v1357_v34  ;;  %v1757_v37 = vpop.f32.mrb[9].mxu1 }
 0xbca   : > { %v1360_v38 = vpop.f32.mrb[10].mxu1 }
 0xbcb   : > { %v1363_v39 = vadd.f32 %v1358_v35, %v2270_v52  ;;  %v1758_v40 = vpop.f32.mrb[11].mxu1 }
 0xbcd   : > { %1364 = vst.msk [vmem:[#allocation2] sm:$0xff] %vm763_vm7, %v1363_v39  ;;  %v1371_v41 = vsel (!%p1637_p1), %vm763_vm7, %v1363_v39, 0.0 }
 0xbce   : > { %1372 = vadd.xlane.f32.xlu0 %v1371_v41 }
 0xc5b   : > { %v1373_v42 = vpop.xlane.xlu0 %1372 }
 0xc5c   : > { %v1374_v43 = vmul.f32 0.03125, %v1373_v42 }
 0xc5e   : > { %v1375_v44 = vsub.f32 %v1363_v39, %v1374_v43 }
 0xc60   : > { %v1376_v45 = vmul.f32 %v1375_v44, %v1375_v44 }
 0xc62   : > { %v1377_v46 = vsel %vm763_vm7, %v1376_v45, 0.0 }
 0xc63   : > { %1378 = vadd.xlane.f32.xlu0 %v1377_v46 }
 0xcf0   : > { %v1379_v47 = vpop.xlane.xlu0 %1378 }
 0xcf1   : > { %v1380_v48 = vmul.f32 0.03125, %v1379_v47 }
 0xcf3   : > { %v1381_v49 = vadd.f32 1e-05, %v1380_v48 }
 0xcf5   : > { %1880 = vrsqrt.f32 %v1381_v49 }
 0xcff   : > { %v1881_v50 = vpop.eup %1880 }
 0xd00   : > { %v1383_v52 = vmul.f32 %v1881_v50, %v1375_v44 }
 0xd02   : > { %v1390_v54 = vmul.f32 %v1638_v51, %v1383_v52 }
 0xd04   : > { %v1397_v55 = vadd.f32 %v1639_v53, %v1390_v54 }
 0xd06   : > { %1398 = vst.msk [vmem:[%s596_s22] sm:$0xff] %vm763_vm7, %v1397_v55 }
 0xd07 PF: > { %s2444_s25 = sld [smem:[#allocation9_spill]]  ;;  %s2447_s17 = sld [smem:[#allocation24_spill]] }
 0xd08   : > { %s2445_s4 = sld [smem:[#allocation7_spill]]  ;;  %s1413_s19 = sshll.u32 %s596_s22, 4  ;;  %s1414_s19 = int_to_ptr.vmem [resolvable:$true] %s1413_s19 }
 0xd09   : > { %s1882_s15 = scalar_lea.vmem %s1414_s19, 128  ;;  %s1991_s0 = smov [#allocation3]  }
 0xd0a   : > { %p1883_p2 = scmp.ne.s32.totalorder %s1414_s19, %s1882_s15  ;;  %s1886_s5 = sshll.u32 %s1991_s0, 4  ;;  %s1887_s5 = int_to_ptr.vmem [resolvable:$false] %s1886_s5 }
 0xd0b   : > { %s1888_s24 = scalar_lea.vmem %s1887_s5, 256  ;;  %p1889_p6 = scmp.lt.s32.totalorder %s1414_s19, %s1887_s5 }
 0xd0c   : > { %p1884_p4 = pnand %p1883_p2, %p2116_p3  ;;  %p1890_p7 = scmp.lt.s32.totalorder %s1888_s24, %s1882_s15 }
 0xd0d   : > { %s1641_s21 = sshll.u32 %s2444_s25, 7  ;;  %s2448_s12 = smov %s2447_s17 }
 0xd0e   : > { %s2333_s18 = scalar_lea.hbm %s2447_s17, %s1641_s21  ;;  %s2449_s26 = sand.u32 1, %s2445_s4  }
 0xd0f   : > { %s1400_s29 = scalar_lea.sflag [#allocation4], %s2449_s26  ;;  %p1885_p5 = pneg %p1884_p4 }
 0xd10   : > { %p1891_p8 = por %p1890_p7, %p1889_p6 }
 0xd12   : > { %p1892_p10 = pnand %p1891_p8, %p1885_p5 }
 0xd14   : > { %1895 = shalt.err (!%p1892_p10)
}
 0xd15   : > { %s1896_s23 = scalar_lea.hbm %s2333_s18, 128  ;;  %s1900_s27 = scalar_lea.hbm %s2448_s12, 256 }
 0xd16   : > { %p1897_p11 = scmp.ne.s32.totalorder %s2333_s18, %s1896_s23  ;;  %p1901_p0 = scmp.lt.u32.totalorder %s2333_s18, %s2448_s12 }
 0xd17   : > { %p1902_p1 = scmp.lt.u32.totalorder %s1900_s27, %s1896_s23  ;;  %p1904_p4 = scmp.lt.u32.totalorder %s1896_s23, %s2333_s18 }
 0xd18   : > { %p1898_p12 = pnand %p1897_p11, %p2116_p3 }
 0xd19   : > { %p1903_p2 = por %p1902_p1, %p1901_p0 }
 0xd1a   : > { %p1899_p13 = pneg %p1898_p12 }
 0xd1b   : > { %p1905_p5 = por %p1904_p4, %p1903_p2 }
 0xd1d   : > { %p1906_p6 = pnand %p1905_p5, %p1899_p13 }
 0xd1f   : > { %1909 = shalt.err (!%p1906_p6)
}
 0xd20   : > { %1759 = dma.vmem_to_hbm [thread:$0]  (%p2116_p3), %s1414_s19, 128, %s2333_s18, %s1400_s29  }
 0xd21 PF: > { %s2450_s25 = sld [smem:[#allocation12_spill]]  ;;  %s2451_s4 = sld [smem:[#allocation6_spill]] }
 0xd27   : > { %p1765_p7 = scmp.ge.s32.totalorder %s2450_s25, 2  ;;  %s1425_s30 = sand.u32 1, %s2451_s4  }
 0xd28   : > { %s1426_s1 = scalar_lea.sflag [#allocation4], %s1425_s30 }
 0xd29   : > { %p1762_p8 = pnand %p1765_p7, %p2126_p9 }
 0xd2b   : > { %1943 = dma.done.wait (!%p1762_p8), %s1426_s1, 128  }
 0xd2c   : > { %1945 = vsyncadd (!%p1762_p8), %s1426_s1, 4294967168  ;;  %s27_s20 = sadd.s32 1, %s2450_s25   ;;  %s2453_s29 = sld [smem:[#allocation7_spill]] }
 0xd2d   : > { %p24_p10 = scmp.ge.s32.totalorder %s27_s20, 6   ;;  %s2454_s30 = sld [smem:[#allocation8_spill]] }
 0xd2e   : > { %s2455_s15 = sld [smem:[#allocation17_spill]]  ;;  %s2456_s16 = sld [smem:[#allocation10_spill]] }
 0xd2f   : > { %s2457_s17 = sld [smem:[#allocation11_spill]]  ;;  %s2458_s18 = sld [smem:[#allocation13_spill]] }
 0xd30   : > { %s2459_s19 = sld [smem:[#allocation15_spill]]  ;;  %26 = sbr.rel (!%p24_p10) target bundleno = 13 (0xd), region = 149 }
 0xd37   :  { %1431 = vsyncpa [#allocation4], 1 }
 0xd38   :  { %1433 = vsyncpa [#allocation4 + $0x1], 1 }

</bundles_post_ra>
